<compile_context>
chip_gen: v6e
topology: v6e:2x2x1
jax: 0.10.0
libtpu: 0.0.40
codegen_flags: <defaults>
</compile_context>

<pallas_src>
import math
from functools import partial

import jax
import jax.numpy as jnp
from jax.experimental import pallas as pl
from jax.experimental.pallas import tpu as pltpu


def _rope_kernel(consts_ref, cos_ref, sin_ref, *, fold, split, half_dense):
    # consts_ref : (2, C)  row 0 = inv_freq[(l % dim) % (dim//2)]  (per-lane freq)
    #                      row 1 = l // dim                        (per-lane pos offset)
    # cos_ref/sin_ref : (rows_blk, C) with C = fold * dim (lane-dense, C % 128 == 0)
    rows_blk, C = cos_ref.shape
    K = C // 2 if half_dense else C          # unique lanes fed to the EUP
    n_top = rows_blk // 2 if split else rows_blk

    consts = consts_ref[...]
    invrow = consts[0:1, :K]                 # (1, K)
    goff = consts[1:2, :K]                   # (1, K)

    # Folded-row offset of this block; positions are (row * fold + goff).
    row0 = (pl.program_id(0) * rows_blk).astype(jnp.float32)
    r = jax.lax.broadcasted_iota(jnp.int32, (n_top, K), 0).astype(jnp.float32)
    ang = ((row0 + r) * float(fold) + goff) * invrow

    ce = jnp.cos(ang)
    se = jnp.sin(ang)

    # Fast path for tiny single blocks (no alignment guarantees needed).
    if not split and not half_dense:
        cos_ref[...] = ce.astype(cos_ref.dtype)
        sin_ref[...] = se.astype(sin_ref.dtype)
        return

    halves = [(0, ce, se)]
    if split:
        # Bottom half of the block = top half rotated by a per-lane constant
        # angle d = n_top * fold * inv_freq  (angle-addition identity; VPU-only).
        d = float(n_top * fold) * invrow
        cd = jnp.cos(d)
        sd = jnp.sin(d)
        halves.append((n_top, ce * cd - se * sd, se * cd + ce * sd))

    for r0, c, s in halves:
        c = c.astype(cos_ref.dtype)
        s = s.astype(sin_ref.dtype)
        cos_ref[r0:r0 + n_top, :K] = c
        sin_ref[r0:r0 + n_top, :K] = s
        if half_dense:
            # Duplicated half (emb = concat(freqs, freqs)): direct 128-aligned
            # lane-slab store, no concatenate temporary.
            cos_ref[r0:r0 + n_top, K:] = c
            sin_ref[r0:r0 + n_top, K:] = s


def _round_up(a, b):
    return -(-a // b) * b


def rotary_embedding(x, inv_freq, seq_dim=1, out_dtype=jnp.float32,
                     max_block_rows=None):
    """Returns (cos, sin) with shapes [1, seq_len, 1, dim], matching PyTorch.

    out_dtype=jnp.bfloat16 halves HBM writeback (recommended on v5e/v6e when
    the consumer applies RoPE in bf16); default float32 matches the reference.
    """
    seq_len = x.shape[seq_dim]
    half = inv_freq.shape[0]
    dim = 2 * half

    # Lane fold: pack `fold` consecutive positions into the lane axis so the
    # output last dim C is always a multiple of 128 (unmasked stores).
    fold = 128 // math.gcd(dim, 128)
    C = fold * dim

    # Duplicated halves are themselves lane-aligned only when fold == 1 and
    # half % 128 == 0 (dim % 256 == 0): compute transcendentals on C//2 lanes.
    half_dense = (fold == 1) and (half % 128 == 0)

    rows = -(-seq_len // fold)               # folded rows covering seq_len
    itemsize = jnp.dtype(out_dtype).itemsize

    # ~4 MiB per output block: 2 outs x 2 pipeline bufs ~= 16 MiB, safe on
    # v7x (32 MiB scoped) and amortizes per-step overhead on v5e/v6e.
    budget_rows = max(16, (4 << 20) // (C * itemsize))
    budget_rows = min(budget_rows, 4096)
    if max_block_rows is not None:
        budget_rows = min(budget_rows, max(8, max_block_rows))

    if rows <= max(16, min(64, budget_rows)):
        # Small table: one exact block (block shape == array shape).
        rows_blk = rows
        r_pad = rows
    else:
        # >= 2 blocks so both TensorCores get work on v7x; blocks are a
        # multiple of 16 rows (enables the 2-way EUP split).
        n_blk = max(2, -(-rows // budget_rows))
        rows_blk = _round_up(-(-rows // n_blk), 16)
        # Small divisor search: avoid a padded tail (and the wrapper slice
        # re-materializing the table) when a nearby block size divides rows.
        best = None
        for cand in range(rows_blk, max(15, rows_blk // 2 - 1), -16):
            if cand >= 16 and rows % cand == 0 and rows // cand >= 2:
                best = cand
                break
        if best is not None:
            rows_blk = best
            r_pad = rows
        else:
            r_pad = _round_up(rows, rows_blk)
    grid = (r_pad // rows_blk,)
    split = (rows_blk >= 16) and (rows_blk % 16 == 0)

    # Per-lane constant tables (tiny; constant index_map -> fetched once).
    lane = jnp.arange(C, dtype=jnp.int32)
    invrow = inv_freq.astype(jnp.float32)[(lane % dim) % half]
    goff = (lane // dim).astype(jnp.float32)
    consts = jnp.stack([invrow, goff], axis=0)       # (2, C)

    kernel = partial(_rope_kernel, fold=fold, split=split, half_dense=half_dense)
    cos_f, sin_f = pl.pallas_call(
        kernel,
        out_shape=(jax.ShapeDtypeStruct((r_pad, C), out_dtype),
                   jax.ShapeDtypeStruct((r_pad, C), out_dtype)),
        grid_spec=pltpu.PrefetchScalarGridSpec(
            num_scalar_prefetch=0,
            grid=grid,
            in_specs=[pl.BlockSpec((2, C), lambda i: (0, 0))],
            out_specs=[pl.BlockSpec((rows_blk, C), lambda i: (i, 0)),
                       pl.BlockSpec((rows_blk, C), lambda i: (i, 0))],
        ),
        compiler_params=pltpu.CompilerParams(
            dimension_semantics=("parallel",),       # independent blocks -> 2 TCs on v7x
            vmem_limit_bytes=32 * 1024 * 1024),
    )(consts)

    # Undo the lane fold with a row-major-compatible reshape (free), then drop
    # any padded tail rows (avoided whenever the divisor search succeeds).
    cos2d = cos_f.reshape(r_pad * fold, dim)
    sin2d = sin_f.reshape(r_pad * fold, dim)
    if r_pad * fold != seq_len:
        cos2d = cos2d[:seq_len]
        sin2d = sin2d[:seq_len]
    return cos2d[None, :, None, :], sin2d[None, :, None, :]


def make_inv_freq(dim, base=10000.0):
    # inv_freq = 1 / base ** (arange(0, dim, 2) / dim)
    return 1.0 / (base ** (jnp.arange(0, dim, 2, dtype=jnp.float32) / dim))


def _reference(seq_len, inv_freq):
    t = jnp.arange(seq_len, dtype=jnp.float32)
    freqs = jnp.einsum("i,j->ij", t, inv_freq)
    emb = jnp.concatenate([freqs, freqs], axis=-1)
    return jnp.cos(emb)[None, :, None, :], jnp.sin(emb)[None, :, None, :]


if __name__ == "__main__":
    key = jax.random.PRNGKey(0)
    # x: (batch, seq, heads, head_dim); forward only reads x.shape[seq_dim]
    batch, seq, heads, dim = 2, 8, 4, 32
    x = jax.random.normal(key, (batch, seq, heads, dim), dtype=jnp.float32)

    inv_freq = make_inv_freq(dim)
    cos, sin = rotary_embedding(x, inv_freq, seq_dim=1)
    jax.block_until_ready((cos, sin))

    cos_ref, sin_ref = _reference(seq, inv_freq)
    assert cos.shape == (1, seq, 1, dim) and sin.shape == (1, seq, 1, dim)
    assert jnp.allclose(cos, cos_ref, atol=1e-4), "cos mismatch"
    assert jnp.allclose(sin, sin_ref, atol=1e-4), "sin mismatch"

    # Extra coverage: ragged seq (fold tail), non-power-of-two dim (lcm fold),
    # half-dense EUP path, multi-block grid with the 2-way EUP split, and the
    # combined split + half-dense path -- all small/fast.
    extra_cases = [
        dict(seq=7,   dim=32,  max_block_rows=None),   # ragged fold tail
        dict(seq=13,  dim=64,  max_block_rows=None),   # ragged, fold=2
        dict(seq=20,  dim=96,  max_block_rows=None),   # dim not dividing 128 (lcm fold)
        dict(seq=8,   dim=256, max_block_rows=None),   # half-dense path
        dict(seq=300, dim=64,  max_block_rows=16),     # multi-block grid + split
        dict(seq=600, dim=256, max_block_rows=None),   # split + half-dense + pad tail
    ]
    for case in extra_cases:
        s2, d2, mbr = case["seq"], case["dim"], case["max_block_rows"]
        x2 = jnp.zeros((1, s2, 1, d2), jnp.float32)
        ifq = make_inv_freq(d2)
        c2, si2 = rotary_embedding(x2, ifq, seq_dim=1, max_block_rows=mbr)
        jax.block_until_ready((c2, si2))
        cr2, sr2 = _reference(s2, ifq)
        assert c2.shape == (1, s2, 1, d2) and si2.shape == (1, s2, 1, d2)
        assert jnp.allclose(c2, cr2, atol=1e-4), f"cos mismatch for {case}"
        assert jnp.allclose(si2, sr2, atol=1e-4), f"sin mismatch for {case}"

    print("KERNEL_OK")
</pallas_src>

<mosaic_0001>
module attributes {stable_mosaic.version = 11 : i64} {
  func.func @_rope_kernel(%arg0: i32, %arg1: memref<2x128xf32, #tpu.memory_space<vmem>>, %arg2: memref<2x128xf32, #tpu.memory_space<vmem>>, %arg3: memref<2x128xf32, #tpu.memory_space<vmem>>) attributes {dimension_semantics = [#tpu.dimension_semantics<parallel>], iteration_bounds = array<i64: 1>, scalar_prefetch = 0 : i64, scratch_operands = 0 : i64, tpu.core_type = #tpu.core_type<tc>, window_params = [{pipeline_mode = #tpu.pipeline_mode<synchronous>, transform_indices = @transform_0, window_bounds = array<i64: 2, 128>}, {transform_indices = @transform_1, window_bounds = array<i64: 2, 128>}, {transform_indices = @transform_2, window_bounds = array<i64: 2, 128>}]} {
    %c0 = arith.constant 0 : index
    %c0_0 = arith.constant 0 : index
    %0 = vector.load %arg1[%c0, %c0_0] : memref<2x128xf32, #tpu.memory_space<vmem>>, vector<2x128xf32>
    %1 = vector.extract_strided_slice %0 {offsets = [0, 0], sizes = [1, 128], strides = [1, 1]} : vector<2x128xf32> to vector<1x128xf32>
    %2 = vector.extract_strided_slice %0 {offsets = [1, 0], sizes = [1, 128], strides = [1, 1]} : vector<2x128xf32> to vector<1x128xf32>
    %c2_i32 = arith.constant 2 : i32
    %3 = arith.muli %arg0, %c2_i32 : i32
    %4 = arith.sitofp %3 : i32 to f32
    %5 = tpu.iota {dimensions = array<i32: 0>} : vector<2x128xi32>
    %6 = arith.sitofp %5 : vector<2x128xi32> to vector<2x128xf32>
    %7 = vector.broadcast %4 : f32 to vector<2x128xf32>
    %8 = arith.addf %7, %6 : vector<2x128xf32>
    %cst = arith.constant 4.000000e+00 : f32
    %9 = vector.broadcast %cst : f32 to vector<2x128xf32>
    %10 = arith.mulf %8, %9 : vector<2x128xf32>
    %11 = vector.broadcast %2 : vector<1x128xf32> to vector<2x128xf32>
    %12 = arith.addf %10, %11 : vector<2x128xf32>
    %13 = vector.broadcast %1 : vector<1x128xf32> to vector<2x128xf32>
    %14 = arith.mulf %12, %13 : vector<2x128xf32>
    %15 = math.cos %14 : vector<2x128xf32>
    %16 = math.sin %14 : vector<2x128xf32>
    %c0_1 = arith.constant 0 : index
    %c0_2 = arith.constant 0 : index
    %17 = vector.load %arg2[%c0_1, %c0_2] : memref<2x128xf32, #tpu.memory_space<vmem>>, vector<2x128xf32>
    tpu.vector_store %arg2[%c0_1, %c0_2], %15 {strides = array<i32>} : memref<2x128xf32, #tpu.memory_space<vmem>>, vector<2x128xf32>,
    %c0_3 = arith.constant 0 : index
    %c0_4 = arith.constant 0 : index
    %18 = vector.load %arg3[%c0_3, %c0_4] : memref<2x128xf32, #tpu.memory_space<vmem>>, vector<2x128xf32>
    tpu.vector_store %arg3[%c0_3, %c0_4], %16 {strides = array<i32>} : memref<2x128xf32, #tpu.memory_space<vmem>>, vector<2x128xf32>,
    return
  }
  func.func @transform_0(%arg0: i32) -> (i32, i32) {
    %c0_i32 = arith.constant 0 : i32
    %c0_i32_0 = arith.constant 0 : i32
    %c0_i32_1 = arith.constant 0 : i32
    return %c0_i32, %c0_i32_0 : i32, i32
  }
  func.func @transform_1(%arg0: i32) -> (i32, i32) {
    %c0_i32 = arith.constant 0 : i32
    %c0_i32_0 = arith.constant 0 : i32
    return %arg0, %c0_i32 : i32, i32
  }
  func.func @transform_2(%arg0: i32) -> (i32, i32) {
    %c0_i32 = arith.constant 0 : i32
    %c0_i32_0 = arith.constant 0 : i32
    return %arg0, %c0_i32 : i32, i32
  }
}

</mosaic_0001>

<bundles_post_ra>
// kernel: tpu_custom_call.1
= control target key start
LH: loop header
LB: loop body
LE: loop exit
PB: predicated region body
PF: predicated region fallthrough
CT: control target
= control target key end

     0   :  { %8 = vsyncpa [#allocation3], 0  ;;  %s426_s0 = inlined_call_operand.hbm [shape: f32[2,128], index: 0, kind: input, shape index: {}]   ;;  %s427_s1 = inlined_call_operand.hbm [shape: f32[2,128], index: 1, kind: output, shape index: {0}]   ;;  %s428_s2 = inlined_call_operand.hbm [shape: f32[2,128], index: 2, kind: output, shape index: {1}]  }
   0x1   :  { %9 = vsyncpa [#allocation4], 0 }
   0x2   :  { %10 = vsyncpa [#allocation7], 0  ;;  %s372_s9 = smov [#allocation2]  }
   0x3   :  { %s17_s10 = sshll.u32 %s372_s9, 4  ;;  %s18_s10 = int_to_ptr.vmem [resolvable:$true] %s17_s10 }
   0x4   :  { %s314_s11 = scalar_lea.vmem %s18_s10, 32  ;;  %p319_p1 = scmp.lt.s32.totalorder %s18_s10, %s18_s10 }
   0x5   :  { %p315_p0 = scmp.ne.s32.totalorder %s18_s10, %s314_s11  ;;  %p320_p2 = scmp.lt.s32.totalorder %s314_s11, %s314_s11 }
   0x7   :  { %p321_p3 = por %p320_p2, %p319_p1 }
   0x9   :  { %p322_p4 = pnand %p321_p3, %p315_p0 }
   0xb   :  { %325 = shalt.err (!%p322_p4)
}
   0xc   :  { %20 = dma.hbm_to_vmem [thread:$0]  %s426_s0, 32, %s18_s10, [#allocation3]  }
   0xd   :  { %366 = dma.done.wait [#allocation3], 32  }
   0xe   :  { %367 = vsyncadd [#allocation3], 4294967264  ;;  %v27_v0 = vlaneseq  ;;  %v24_v6 = vld [vmem:[#allocation2] sm:$0x3]  ;;  %v373_v22 = vmov 683565275  }
   0xf   :  { %v374_v24 = vmov 2475754826   ;;  %v375_v26 = vmov 2131351028   ;;  %v376_v28 = vmov 2102212464  }
  0x10   :  { %v28_v1 = vshrl.u32 %v27_v0, 7  ;;  %v377_v30 = vmov 920167782   ;;  %v378_v37 = vmov 1326507024   ;;  %s379_s0 = smov [#allocation5]  }
  0x11   :  { %s258_s14 = sshll.u32 %s379_s0, 4  ;;  %s380_s15 = smov [#allocation6]   ;;  %s259_s14 = int_to_ptr.vmem [resolvable:$true] %s258_s14 }
  0x12   :  { %v29_v2 = vcvt.s32.f32 %v28_v1  ;;  %v35_v3 = vsub.s32 1, %v28_v1  ;;  %v40_v4 = vsub.s32 0, %v28_v1  ;;  %s268_s16 = sshll.u32 %s380_s15, 4  ;;  %s326_s17 = scalar_lea.vmem %s259_s14, 32  ;;  %s269_s16 = int_to_ptr.vmem [resolvable:$true] %s268_s16 }
  0x13   :  { %p327_p5 = scmp.ne.s32.totalorder %s259_s14, %s326_s17  ;;  %p331_p6 = scmp.lt.s32.totalorder %s259_s14, %s259_s14 }
  0x14   :  { %v32_v5 = vmul.f32 4.0, %v29_v2  ;;  %v36_v7 = vrot.slane %v24_v6, %v35_v3  ;;  %v41_v8 = vrot.slane %v24_v6, %v40_v4  ;;  %p332_p7 = scmp.lt.s32.totalorder %s326_s17, %s326_s17 }
  0x16   :  { %v37_v9 = vadd.f32 %v36_v7, %v32_v5  ;;  %p333_p8 = por %p332_p7, %p331_p6 }
  0x18   :  { %v399_v10 = vmul.f32 %v41_v8, %v37_v9  ;;  %p334_p9 = pnand %p333_p8, %p327_p5 }
  0x1a   :  { %v46_v11 = vand.u32 2139095040, %v399_v10  ;;  %v43_v13 = vand.u32 2147483647, %v399_v10  ;;  %vm45_vm7 = vcmp.lt.s32.totalorder %v399_v10, 0  ;;  %vm135_vm15 = vweird.f32 %v399_v10 }
  0x1c   :  { %v47_v12 = vshrl.u32 %v46_v11, 23  ;;  %v50_v16 = vand.u32 8388607, %v43_v13  ;;  %vm44_vm8 = vcmp.le.f32.partialorder %v43_v13, 0.7853982 }
  0x1e   :  { %v281_v14 = vadd.s32 4294967169, %v47_v12  ;;  %v51_v19 = vor.u32 8388608, %v50_v16 }
  0x20   :  { %v53_v15 = vadd.s32 1, %v281_v14  ;;  %v91_v39 = vshll.u32 %v51_v19, 8 }
  0x22   :  { %vm54_vm0 = vcmp.gt.s32.totalorder %v53_v15, 0 }
  0x23   :  { %v55_v17 = vsel %vm54_vm0, %v53_v15, 0 }
  0x24   :  { %v57_v18 = vand.u32 31, %v55_v17  ;;  %v56_v20 = vshrl.u32 %v55_v17, 5 }
  0x26   :  { %v58_v21 = vsub.s32 32, %v57_v18  ;;  %v60_v23 = vshll.u32 %v373_v22, %v57_v18  ;;  %v63_v25 = vshll.u32 %v374_v24, %v57_v18  ;;  %v66_v27 = vshll.u32 %v375_v26, %v57_v18 }
  0x27   :  { %v69_v29 = vshll.u32 %v376_v28, %v57_v18  ;;  %v72_v31 = vshll.u32 %v377_v30, %v57_v18  ;;  %vm75_vm1 = vcmp.lt.s32.totalorder %v56_v20, 1  ;;  %vm78_vm2 = vcmp.lt.s32.totalorder %v56_v20, 4 }
  0x28   :  { %v59_v32 = vshrl.u32 %v373_v22, %v58_v21  ;;  %v61_v33 = vshrl.u32 %v374_v24, %v58_v21  ;;  %v64_v34 = vshrl.u32 %v375_v26, %v58_v21  ;;  %v67_v35 = vshrl.u32 %v376_v28, %v58_v21 }
  0x29   :  { %v70_v36 = vshrl.u32 %v377_v30, %v58_v21  ;;  %v73_v38 = vshrl.u32 %v378_v37, %v58_v21  ;;  %vm76_vm3 = vcmp.lt.s32.totalorder %v56_v20, 2  ;;  %vm77_vm4 = vcmp.lt.s32.totalorder %v56_v20, 3 }
  0x2a   :  { %v62_v40 = vor.u32 %v61_v33, %v60_v23  ;;  %v65_v41 = vor.u32 %v64_v34, %v63_v25  ;;  %v68_v42 = vor.u32 %v67_v35, %v66_v27 }
  0x2b   :  { %v71_v43 = vor.u32 %v70_v36, %v69_v29  ;;  %v74_v44 = vor.u32 %v73_v38, %v72_v31 }
  0x2c   :  { %v79_v45 = vsel %vm75_vm1, %v59_v32, %v62_v40  ;;  %v80_v46 = vsel %vm78_vm2, %v68_v42, 2102212464  ;;  %v83_v47 = vsel %vm75_vm1, %v62_v40, %v65_v41  ;;  %v87_v48 = vsel %vm75_vm1, %v65_v41, %v68_v42 }
  0x2d   :  { %v81_v49 = vsel %vm77_vm4, %v65_v41, %v80_v46  ;;  %v84_v50 = vsel %vm78_vm2, %v71_v43, 920167782  ;;  %v88_v51 = vsel %vm78_vm2, %v74_v44, 1326507024 }
  0x2e   :  { %v85_v52 = vsel %vm77_vm4, %v68_v42, %v84_v50  ;;  %v89_v53 = vsel %vm77_vm4, %v71_v43, %v88_v51  ;;  %v82_v54 = vsel %vm76_vm3, %v79_v45, %v81_v49 }
  0x2f   :  { %v86_v55 = vsel %vm76_vm3, %v83_v47, %v85_v52  ;;  %v90_v56 = vsel %vm76_vm3, %v87_v48, %v89_v53  ;;  %v98_v61 = vmul.u32 %v91_v39, %v82_v54 }
  0x30   :  { %v405_v57 = vmul.u32.u64.low %v91_v39, %v90_v56  ;;  %v406_v58 = vmul.u32.u64.high %v91_v39, %v90_v56, %v405_v57  ;;  %v408_v59 = vmul.u32.u64.low %v91_v39, %v86_v55  ;;  %v409_v60 = vmul.u32.u64.high %v91_v39, %v86_v55, %v408_v59 }
  0x32   :  { %vm100_vm5 = vc.u32 %v406_v58, %v408_v59  ;;  %v101_v62 = vadd.s32 1, %v409_v60  ;;  %v99_v9 = vadd.s32 %v408_v59, %v406_v58 }
  0x34   :  { %v102_v63 = vsel %vm100_vm5, %v101_v62, %v409_v60 }
  0x35   :  { %v103_v0 = vadd.s32 %v102_v63, %v98_v61 }
  0x37   :  { %v104_v1 = vadd.s32 536870912, %v103_v0 }
  0x39   :  { %v105_v2 = vshrl.u32 %v104_v1, 30 }
  0x3b   :  { %v106_v3 = vshll.u32 %v105_v2, 30  ;;  %v129_v24 = vsub.s32 4, %v105_v2 }
  0x3d   :  { %v107_v4 = vsub.s32 %v103_v0, %v106_v3  ;;  %v130_v27 = vsel %vm45_vm7, %v129_v24, %v105_v2 }
  0x3e   :  { %v132_v29 = vsel %vm44_vm8, 0, %v130_v27 }
  0x3f   :  { %v109_v5 = vsub.s32 0, %v107_v4  ;;  %v239_v30 = vadd.s32 3, %v132_v29  ;;  %v136_v31 = vand.u32 3, %v132_v29 }
  0x41   :  { %v282_v6 = vmin.u32 %v109_v5, %v107_v4  ;;  %v240_v32 = vand.u32 3, %v239_v30  ;;  %vm141_vm9 = vcmp.eq.s32.totalorder %v136_v31, 2  ;;  %vm138_vm11 = vcmp.eq.s32.totalorder %v136_v31, 0 }
  0x42   :  { %vm137_vm13 = vcmp.lt.s32.totalorder %v136_v31, 2 }
  0x43   :  { %v111_v7 = vclz %v282_v6  ;;  %vm245_vm10 = vcmp.eq.s32.totalorder %v240_v32, 2  ;;  %vm242_vm12 = vcmp.eq.s32.totalorder %v240_v32, 0  ;;  %vm241_vm14 = vcmp.lt.s32.totalorder %v240_v32, 2 }
  0x45   :  { %v283_v8 = vadd.s32 4294967294, %v111_v7 }
  0x47   :  { %vm284_vm6 = vcmp.lt.s32.totalorder %v283_v8, 0 }
  0x48   :  { %v114_v11 = vsel %vm284_vm6, 0, %v283_v8 }
  0x49   :  { %v115_v12 = vsub.s32 32, %v114_v11  ;;  %v116_v14 = vshll.u32 %v107_v4, %v114_v11  ;;  %v119_v15 = vsub.s32 4294967266, %v114_v11 }
  0x4b   :  { %v117_v16 = vshrl.u32 %v99_v9, %v115_v12  ;;  %v120_v17 = vadd.s32 127, %v119_v15 }
  0x4d   :  { %v118_v18 = vor.u32 %v117_v16, %v116_v14  ;;  %v121_v19 = vshll.u32 %v120_v17, 23 }
  0x4f   :  { %v122_v20 = vor.u32 4788187, %v121_v19  ;;  %v125_v21 = vcvt.s32.f32 %v118_v18 }
  0x51   :  { %v123_v22 = vand.u32 2147483647, %v122_v20 }
  0x53   :  { %v126_v23 = vmul.f32 %v125_v21, %v123_v22 }
  0x55   :  { %v127_v25 = vxor.u32 2147483648, %v126_v23 }
  0x57   :  { %v128_v26 = vsel %vm45_vm7, %v127_v25, %v126_v23 }
  0x58   :  { %v131_v28 = vsel %vm44_vm8, %v399_v10, %v128_v26 }
  0x59   :  { %302 = vcosq.f32 %v131_v28 }
  0x5a   :  { %304 = vsinq.f32 %v131_v28 }
  0x66   :  { %v303_v33 = vpop.eup %302 }
  0x67   :  { %v305_v34 = vpop.eup %304  ;;  %v142_v35 = vxor.u32 2147483648, %v303_v33 }
  0x68   :  { %v139_v13 = vxor.u32 2147483648, %v305_v34 }
  0x69   :  { %v143_v36 = vsel %vm141_vm9, %v142_v35, %v305_v34  ;;  %v247_v37 = vsel %vm245_vm10, %v142_v35, %v305_v34 }
  0x6a   :  { %v140_v38 = vsel %vm138_vm11, %v303_v33, %v139_v13  ;;  %v244_v39 = vsel %vm242_vm12, %v303_v33, %v139_v13 }
  0x6b   :  { %v144_v40 = vsel %vm137_vm13, %v140_v38, %v143_v36  ;;  %v248_v41 = vsel %vm241_vm14, %v244_v39, %v247_v37 }
  0x6c   :  { %v145_v42 = vsel %vm135_vm15, nan, %v144_v40  ;;  %v249_v43 = vsel %vm135_vm15, nan, %v248_v41 }
  0x6d   :  { %250 = vst [vmem:[#allocation5] sm:$0x3] %v145_v42  ;;  %251 = vst [vmem:[#allocation6] sm:$0x3] %v249_v43 }
  0x6e   :  { %337 = shalt.err (!%p334_p9)
}
  0x6f   :  { %261 = dma.vmem_to_hbm [thread:$0]  %s259_s14, 32, %s427_s1, [#allocation4]  }
  0x70   :  { %s346_s20 = scalar_lea.vmem %s269_s16, 32  ;;  %p351_p11 = scmp.lt.s32.totalorder %s269_s16, %s269_s16 }
  0x71   :  { %p347_p10 = scmp.ne.s32.totalorder %s269_s16, %s346_s20  ;;  %p352_p12 = scmp.lt.s32.totalorder %s346_s20, %s346_s20 }
  0x73   :  { %p353_p13 = por %p352_p12, %p351_p11 }
  0x75   :  { %p354_p0 = pnand %p353_p13, %p347_p10 }
  0x77   :  { %357 = shalt.err (!%p354_p0)
}
  0x78   :  { %271 = dma.vmem_to_hbm [thread:$0]  %s269_s16, 32, %s428_s2, [#allocation7]  }
  0x79   :  { %368 = dma.done.wait [#allocation4], 32  }
  0x7a   :  { %369 = vsyncadd [#allocation4], 4294967264 }
  0x7b   :  { %370 = dma.done.wait [#allocation7], 32  }
  0x7c   :  { %371 = vsyncadd [#allocation7], 4294967264 }
  0x7d   :  { %278 = vsyncpa [#allocation3], 1 }
  0x7e   :  { %279 = vsyncpa [#allocation4], 1 }
  0x7f   :  { %280 = vsyncpa [#allocation7], 1 }

</bundles_post_ra>
